<compile_context>
chip_gen: v5e
topology: v5e:2x2
jax: 0.10.0
libtpu: 0.0.40
codegen_flags: <defaults>
</compile_context>

<pallas_src>
import functools

import numpy as np

import jax
import jax.numpy as jnp
from jax.experimental import pallas as pl
from jax.experimental.pallas import tpu as pltpu

WALK_LENGTH = 3  # matches the module default


def _gkat_mask_kernel(adj_ref, mask_ref, *, walk_length, row_tile, acc_dtype):
    """mask_rows = (((I + A)^walk_length)[rows, :] > 0).astype(out_dtype)

    adj_ref  : [N, N] exact 0/1 support of (I + A) in the MXU operand dtype
               (VMEM-resident across the whole grid).
    mask_ref : [row_tile, N] output row block.
    """
    op_dtype = adj_ref.dtype
    start = pl.multiple_of(pl.program_id(0) * row_tile, row_tile)
    cur = adj_ref[pl.ds(start, row_tile), :]          # (row_tile, N) row block

    if walk_length == 1:
        # (I + A) support itself; already exact 0/1.
        mask_ref[...] = cur.astype(mask_ref.dtype)
        return

    base = adj_ref[...]                               # (N, N) exact 0/1
    for step in range(walk_length - 1):               # static unroll, small L
        prod = jnp.dot(cur, base, preferred_element_type=acc_dtype)
        if step == walk_length - 2:
            # Final multiply: threshold straight to the output dtype — no
            # f32 -> operand-dtype -> f32 round trip over the full block.
            mask_ref[...] = (prod > 0).astype(mask_ref.dtype)
        else:
            # Re-binarize so MXU operands stay exact 0/1 in the narrow dtype
            # (products are counts <= N, exact in the f32/int32 accumulator).
            cur = (prod > 0).astype(op_dtype)


def _select_operand_dtype(num_nodes: int):
    """MXU operand dtype per generation; only matters once matmuls dominate."""
    if num_nodes < 512:
        return jnp.bfloat16  # latency / prologue bound: dtype choice irrelevant
    try:
        kind = jax.devices()[0].device_kind.lower()
    except Exception:
        return jnp.bfloat16
    # v5e / v6e: native int8 MXU path (~2x bf16 rate, half the operand footprint).
    # v7x: no integer MXU (bf16 / fp8 only) -> stay on bf16.
    if ("v5 lite" in kind or "v5e" in kind or "v5litepod" in kind
            or "v6" in kind or "trillium" in kind):
        return jnp.int8
    return jnp.bfloat16


def gkat_mask_generator(edge_index: jnp.ndarray, num_nodes: int,
                        walk_length: int = WALK_LENGTH, *,
                        operand_dtype=None, out_dtype=jnp.float32,
                        row_tile: int | None = None) -> jnp.ndarray:
    """JAX/Pallas equivalent of GKATMaskGenerator.forward.

    edge_index: int array of shape (2, E)
    returns: (num_nodes, num_nodes) array in `out_dtype` (float32 to match the
             PyTorch module; pass bf16 if the consumer tolerates it — 0/1 is
             exact and it halves the dominant HBM writeback).
    """
    if walk_length < 1:
        raise ValueError(f"walk_length must be >= 1, got {walk_length}")

    edge_index = edge_index.astype(jnp.int32)
    src, dst = edge_index[0], edge_index[1]

    if operand_dtype is None:
        operand_dtype = _select_operand_dtype(num_nodes)
    operand_dtype = np.dtype(operand_dtype)
    out_dtype = np.dtype(out_dtype)
    acc_dtype = jnp.int32 if operand_dtype == np.dtype(jnp.int8) else jnp.float32

    # Pad N to a lane-dense multiple of 128.  Pad rows/cols are all-zero (no
    # identity in the pad), so ((I+A)_pad)^k = block_diag((I+A)^k, 0) and the
    # top-left N x N slice of the result is exact.
    n_pad = max(128, ((num_nodes + 127) // 128) * 128)

    if row_tile is None:
        row_tile = 256 if (n_pad >= 1024 and n_pad % 256 == 0) else 128
    row_tile = min(row_tile, n_pad)
    assert n_pad % row_tile == 0
    grid = (n_pad // row_tile,)

    # Glue (plain JAX): single scatter-SET of ones at [edges ++ diagonal] builds
    # the exact 0/1 support of (I + A) directly in the MXU operand dtype.
    # Duplicate edges just re-set 1, so there is no saturation issue and the
    # kernel needs no iota/compare/OR prologue.
    diag = jnp.arange(num_nodes, dtype=jnp.int32)
    rows = jnp.concatenate([src, diag])
    cols = jnp.concatenate([dst, diag])
    base = jnp.zeros((n_pad, n_pad), dtype=operand_dtype).at[rows, cols].set(1)

    # VMEM budget: resident base (budget its double buffer), double-buffered
    # output row block, and the cur/prod working set; clamp to physical VMEM.
    op_b = operand_dtype.itemsize
    out_b = out_dtype.itemsize
    need = (2 * n_pad * n_pad * op_b
            + 2 * row_tile * n_pad * out_b
            + row_tile * n_pad * (4 + op_b + out_b))
    try:
        phys_vmem = pltpu.get_tpu_info().vmem_capacity_bytes
    except Exception:
        phys_vmem = 64 * 1024 * 1024  # v7x floor; always a legal cap
    vmem_limit = int(min(max(need + (4 << 20), 16 << 20), phys_vmem))

    cost = pl.CostEstimate(
        flops=2 * (walk_length - 1) * n_pad * n_pad * n_pad,
        transcendentals=0,
        bytes_accessed=n_pad * n_pad * (op_b + out_b),
    )

    kernel = functools.partial(_gkat_mask_kernel, walk_length=walk_length,
                               row_tile=row_tile, acc_dtype=acc_dtype)

    mask = pl.pallas_call(
        kernel,
        out_shape=jax.ShapeDtypeStruct((n_pad, n_pad), out_dtype),
        grid=grid,
        in_specs=[pl.BlockSpec((n_pad, n_pad), lambda i: (0, 0))],
        out_specs=pl.BlockSpec((row_tile, n_pad), lambda i: (i, 0)),
        compiler_params=pltpu.CompilerParams(
            dimension_semantics=("parallel",),
            vmem_limit_bytes=vmem_limit),
        cost_estimate=cost,
    )(base)

    if n_pad != num_nodes:
        mask = mask[:num_nodes, :num_nodes]
    return mask


def _reference(edge_index, num_nodes, walk_length=WALK_LENGTH):
    """Pure-JAX f32 reference of the PyTorch forward, for correctness checks."""
    src, dst = edge_index[0], edge_index[1]
    adj = jnp.zeros((num_nodes, num_nodes), dtype=jnp.float32)
    adj = adj.at[src, dst].add(1.0)
    adj = adj + jnp.eye(num_nodes, dtype=jnp.float32)
    mask = adj
    cur = adj
    for _ in range(walk_length - 1):
        cur = cur @ adj
        mask = mask + cur
    return (mask > 0).astype(jnp.float32)


if __name__ == "__main__":
    key = jax.random.PRNGKey(0)
    num_nodes = 128
    num_edges = 64

    k_src, k_dst = jax.random.split(key)
    edge_index = jnp.stack([
        jax.random.randint(k_src, (num_edges,), 0, num_nodes),
        jax.random.randint(k_dst, (num_edges,), 0, num_nodes),
    ], axis=0).astype(jnp.int32)  # shape (2, E)

    mask = gkat_mask_generator(edge_index, num_nodes, WALK_LENGTH)
    mask = jax.block_until_ready(mask)

    ref = _reference(edge_index, num_nodes, WALK_LENGTH)
    assert mask.shape == (num_nodes, num_nodes)
    assert mask.dtype == jnp.float32
    assert bool(jnp.all(mask == ref))

    # Extra checks: non-multiple-of-128 N (exercises padding) and small L
    # (exercises the walk_length==1 early-out and the 1-matmul path).
    n2 = 100
    e2 = jnp.stack([
        jax.random.randint(k_dst, (32,), 0, n2),
        jax.random.randint(k_src, (32,), 0, n2),
    ], axis=0).astype(jnp.int32)
    for wl in (1, 2):
        m2 = jax.block_until_ready(gkat_mask_generator(e2, n2, wl))
        assert bool(jnp.all(m2 == _reference(e2, n2, wl)))

    print("KERNEL_OK")
</pallas_src>

<mosaic_0001>
module attributes {stable_mosaic.version = 11 : i64} {
  func.func @_gkat_mask_kernel(%arg0: i32, %arg1: memref<128x128xbf16, #tpu.memory_space<vmem>>, %arg2: memref<128x128xf32, #tpu.memory_space<vmem>>) attributes {dimension_semantics = [#tpu.dimension_semantics<parallel>], iteration_bounds = array<i64: 1>, scalar_prefetch = 0 : i64, scratch_operands = 0 : i64, tpu.core_type = #tpu.core_type<tc>, window_params = [{pipeline_mode = #tpu.pipeline_mode<synchronous>, transform_indices = @transform_0, window_bounds = array<i64: 128, 128>}, {transform_indices = @transform_1, window_bounds = array<i64: 128, 128>}]} {
    %c128_i32 = arith.constant 128 : i32
    %0 = arith.muli %arg0, %c128_i32 : i32
    %1 = tpu.assume_multiple %0, 128 : i32
    %2 = arith.index_cast %1 : i32 to index
    %c0 = arith.constant 0 : index
    %3 = vector.load %arg1[%2, %c0] : memref<128x128xbf16, #tpu.memory_space<vmem>>, vector<128x128xbf16>
    %c0_0 = arith.constant 0 : index
    %c0_1 = arith.constant 0 : index
    %4 = vector.load %arg1[%c0_0, %c0_1] : memref<128x128xbf16, #tpu.memory_space<vmem>>, vector<128x128xbf16>
    %cst = arith.constant dense<0.000000e+00> : vector<128x128xf32>
    %5 = tpu.matmul %3, %4, %cst {dimension_numbers = #tpu.dot_dimension_numbers<[1], [0], [0], [1], [0, 0, 1, 1], [], []>} : vector<128x128xbf16>, vector<128x128xbf16>, vector<128x128xf32> -> vector<128x128xf32>
    %cst_2 = arith.constant 0.000000e+00 : f32
    %6 = vector.broadcast %cst_2 : f32 to vector<128x128xf32>
    %7 = arith.cmpf ogt, %5, %6 : vector<128x128xf32>
    %8 = arith.extui %7 : vector<128x128xi1> to vector<128x128xi32>
    %9 = arith.sitofp %8 : vector<128x128xi32> to vector<128x128xf32>
    %10 = arith.truncf %9 : vector<128x128xf32> to vector<128x128xbf16>
    %cst_3 = arith.constant dense<0.000000e+00> : vector<128x128xf32>
    %11 = tpu.matmul %10, %4, %cst_3 {dimension_numbers = #tpu.dot_dimension_numbers<[1], [0], [0], [1], [0, 0, 1, 1], [], []>} : vector<128x128xbf16>, vector<128x128xbf16>, vector<128x128xf32> -> vector<128x128xf32>
    %cst_4 = arith.constant 0.000000e+00 : f32
    %12 = vector.broadcast %cst_4 : f32 to vector<128x128xf32>
    %13 = arith.cmpf ogt, %11, %12 : vector<128x128xf32>
    %14 = arith.extui %13 : vector<128x128xi1> to vector<128x128xi32>
    %15 = arith.sitofp %14 : vector<128x128xi32> to vector<128x128xf32>
    %c0_5 = arith.constant 0 : index
    %c0_6 = arith.constant 0 : index
    %16 = vector.load %arg2[%c0_5, %c0_6] : memref<128x128xf32, #tpu.memory_space<vmem>>, vector<128x128xf32>
    tpu.vector_store %arg2[%c0_5, %c0_6], %15 {strides = array<i32>} : memref<128x128xf32, #tpu.memory_space<vmem>>, vector<128x128xf32>,
    return
  }
  func.func @transform_0(%arg0: i32) -> (i32, i32) {
    %c0_i32 = arith.constant 0 : i32
    %c0_i32_0 = arith.constant 0 : i32
    %c0_i32_1 = arith.constant 0 : i32
    return %c0_i32, %c0_i32_0 : i32, i32
  }
  func.func @transform_1(%arg0: i32) -> (i32, i32) {
    %c0_i32 = arith.constant 0 : i32
    %c0_i32_0 = arith.constant 0 : i32
    return %arg0, %c0_i32 : i32, i32
  }
}

</mosaic_0001>

<bundles_post_ra>
// kernel: tpu_custom_call.1
= control target key start
LH: loop header
LB: loop body
LE: loop exit
PB: predicated region body
PF: predicated region fallthrough
CT: control target
= control target key end

     0   :  { %6 = vsyncpa [#allocation3], 0  ;;  %s641_s0 = inlined_call_operand.hbm [shape: bf16[128,128], index: 0, kind: input, shape index: {}]   ;;  %s642_s1 = inlined_call_operand.hbm [shape: f32[128,128], index: 1, kind: output, shape index: {}]  }
   0x1   :  { %7 = vsyncpa [#allocation4], 0  ;;  %s12_s8 = sshll.u32 %s641_s0, 4  ;;  %s601_s9 = smov [#allocation2]   ;;  %s13_s8 = int_to_ptr.hbm [resolvable:$true] %s12_s8 }
   0x2   :  { %s14_s10 = sshll.u32 %s601_s9, 4  ;;  %s602_s11 = smov 64   ;;  %s15_s10 = int_to_ptr.vmem [resolvable:$true] %s14_s10 }
   0x3   :  { %s603_s12 = smov 4  }
   0x4   :  { %20 = dma.hbm_to_vmem [thread:$0]  %s13_s8, 1024, %s15_s10, [#allocation3], %s602_s11, %s602_s11, %s603_s12  }
   0x5   :  { %597 = dma.done.wait [#allocation3], 1024  }
   0x6   :  { %598 = vsyncadd [#allocation3], 4294966272  ;;  %v524_v0 = vld [vmem:[#allocation2 + $0x38] sm:$0xff]  ;;  %v523_v1 = vld [vmem:[#allocation2 + $0x30] sm:$0xff]  ;;  %v604_v19 = vmov 1.0|1.0  }
   0x7   :  { %158 = vmatpush.bf16.msra.mxu0 %v524_v0  ;;  %525 = vmatpush.bf16.msra.mxu2 %v524_v0  ;;  %v522_v2 = vld [vmem:[#allocation2 + $0x28] sm:$0xff]  ;;  %v521_v3 = vld [vmem:[#allocation2 + $0x20] sm:$0xff]  ;;  %v520_v4 = vld [vmem:[#allocation2 + $0x18] sm:$0xff]  ;;  %v605_v34 = vmov 0.0   ;;  %s606_s0 = smov [#allocation5]   ;;  %s382_s16 = sshll.u32 %s642_s1, 4  ;;  %s383_s16 = int_to_ptr.hbm [resolvable:$true] %s382_s16 }
   0x8   :  { %263 = vmatpush.bf16.msra.mxu1 %v524_v0  ;;  %533 = vmatpush.bf16.msra.mxu3 %v524_v0  ;;  %v519_v5 = vld [vmem:[#allocation2 + $0x10] sm:$0xff]  ;;  %v518_v6 = vld [vmem:[#allocation2 + $0x8] sm:$0xff]  ;;  %v517_v7 = vld [vmem:[#allocation2] sm:$0xff]  ;;  %s380_s13 = sshll.u32 %s606_s0, 4  ;;  %s607_s17 = smov 128   ;;  %s381_s13 = int_to_ptr.vmem [resolvable:$true] %s380_s13 }
   0x9   :  { %v509_v8 = vld [vmem:[#allocation2] sm:$0xff]  ;;  %v510_v10 = vld [vmem:[#allocation2 + $0x8] sm:$0xff]  ;;  %v511_v12 = vld [vmem:[#allocation2 + $0x10] sm:$0xff]  ;;  %s608_s18 = smov 8  }
   0xa   :  { %v513_v9 = vld [vmem:[#allocation2 + $0x20] sm:$0xff]  ;;  %v514_v11 = vld [vmem:[#allocation2 + $0x28] sm:$0xff]  ;;  %v515_v13 = vld [vmem:[#allocation2 + $0x30] sm:$0xff] }
   0xb   :  { %159 = vmatpush.bf16.msra.mxu0 %v523_v1  ;;  %526 = vmatpush.bf16.msra.mxu2 %v523_v1  ;;  %v512_v14 = vld [vmem:[#allocation2 + $0x18] sm:$0xff] }
   0xc   :  { %264 = vmatpush.bf16.msra.mxu1 %v523_v1  ;;  %534 = vmatpush.bf16.msra.mxu3 %v523_v1  ;;  %v516_v15 = vld [vmem:[#allocation2 + $0x38] sm:$0xff] }
   0xf   :  { %160 = vmatpush.bf16.msra.mxu0 %v522_v2  ;;  %527 = vmatpush.bf16.msra.mxu2 %v522_v2 }
  0x10   :  { %265 = vmatpush.bf16.msra.mxu1 %v522_v2  ;;  %535 = vmatpush.bf16.msra.mxu3 %v522_v2 }
  0x13   :  { %161 = vmatpush.bf16.msra.mxu0 %v521_v3  ;;  %528 = vmatpush.bf16.msra.mxu2 %v521_v3 }
  0x14   :  { %266 = vmatpush.bf16.msra.mxu1 %v521_v3  ;;  %536 = vmatpush.bf16.msra.mxu3 %v521_v3 }
  0x17   :  { %162 = vmatpush.bf16.msra.mxu0 %v520_v4  ;;  %529 = vmatpush.bf16.msra.mxu2 %v520_v4 }
  0x18   :  { %267 = vmatpush.bf16.msra.mxu1 %v520_v4  ;;  %537 = vmatpush.bf16.msra.mxu3 %v520_v4 }
  0x1b   :  { %163 = vmatpush.bf16.msra.mxu0 %v519_v5  ;;  %530 = vmatpush.bf16.msra.mxu2 %v519_v5 }
  0x1c   :  { %268 = vmatpush.bf16.msra.mxu1 %v519_v5  ;;  %538 = vmatpush.bf16.msra.mxu3 %v519_v5 }
  0x1f   :  { %164 = vmatpush.bf16.msra.mxu0 %v518_v6  ;;  %531 = vmatpush.bf16.msra.mxu2 %v518_v6 }
  0x20   :  { %269 = vmatpush.bf16.msra.mxu1 %v518_v6  ;;  %539 = vmatpush.bf16.msra.mxu3 %v518_v6 }
  0x23   :  { %165 = vmatpush.bf16.msra.mxu0 %v517_v7  ;;  %532 = vmatpush.bf16.msra.mxu2 %v517_v7 }
  0x24   :  { %270 = vmatpush.bf16.msra.mxu1 %v517_v7  ;;  %540 = vmatpush.bf16.msra.mxu3 %v517_v7 }
  0x26   :  { %166 = vmatmul.bf16.vlgmr.msra.gmra.mxu0 %v509_v8  ;;  %186 = vmatmul.bf16.vlgmr.msra.gmra.mxu2 %v513_v9 }
  0x36   :  { %171 = vmatmul.bf16.gmra.mxu0 %v510_v10  ;;  %191 = vmatmul.bf16.gmra.mxu2 %v514_v11 }
  0x46   :  { %176 = vmatmul.bf16.gmra.mxu0 %v511_v12  ;;  %196 = vmatmul.bf16.gmra.mxu2 %v515_v13 }
  0x56   :  { %181 = vmatmul.bf16.gmra.mxu0 %v512_v14  ;;  %201 = vmatmul.bf16.gmra.mxu2 %v516_v15 }
  0xa3   :  { %v167_v16 = vpop.f32.mrf.mxu0 }
  0xa4   :  { %vm207_vm0 = vcmp.gt.f32.partialorder %v167_v16, 0.0 }
  0xa9   :  { %v187_v17 = vpop.f32.mrf.mxu2 }
  0xaa   :  { %vm215_vm3 = vcmp.gt.f32.partialorder %v187_v17, 0.0 }
  0xab   :  { %v169_v18 = vpop.f32.mrf.mxu0 }
  0xac   :  { %vm208_vm1 = vcmp.gt.f32.partialorder %v169_v18, 0.0 }
  0xad   :  { %vm477_vm2 = vmpackc.low %vm208_vm1, %vm207_vm0 }
  0xae   :  { %478 = vmatmul.msk.bf16.vlgmr.msra.gmra.mxu1 %vm477_vm2, %v604_v19 }
  0xb1   :  { %v189_v20 = vpop.f32.mrf.mxu2 }
  0xb2   :  { %vm216_vm4 = vcmp.gt.f32.partialorder %v189_v20, 0.0 }
  0xb3   :  { %vm485_vm5 = vmpackc.low %vm216_vm4, %vm215_vm3  ;;  %v172_v21 = vpop.f32.mrf.mxu0 }
  0xb4   :  { %486 = vmatmul.msk.bf16.vlgmr.msra.gmra.mxu3 %vm485_vm5, %v604_v19  ;;  %vm209_vm6 = vcmp.gt.f32.partialorder %v172_v21, 0.0 }
  0xb9   :  { %v192_v22 = vpop.f32.mrf.mxu2 }
  0xba   :  { %vm217_vm9 = vcmp.gt.f32.partialorder %v192_v22, 0.0 }
  0xbb   :  { %v174_v23 = vpop.f32.mrf.mxu0 }
  0xbc   :  { %vm210_vm7 = vcmp.gt.f32.partialorder %v174_v23, 0.0 }
  0xbd   :  { %vm479_vm8 = vmpackc.low %vm210_vm7, %vm209_vm6 }
  0xbe   :  { %480 = vmatmul.msk.bf16.gmra.mxu1 %vm479_vm8, %v604_v19 }
  0xc1   :  { %v194_v24 = vpop.f32.mrf.mxu2 }
  0xc2   :  { %vm218_vm10 = vcmp.gt.f32.partialorder %v194_v24, 0.0 }
  0xc3   :  { %vm487_vm11 = vmpackc.low %vm218_vm10, %vm217_vm9  ;;  %v177_v25 = vpop.f32.mrf.mxu0 }
  0xc4   :  { %488 = vmatmul.msk.bf16.gmra.mxu3 %vm487_vm11, %v604_v19  ;;  %vm211_vm12 = vcmp.gt.f32.partialorder %v177_v25, 0.0 }
  0xc9   :  { %v197_v26 = vpop.f32.mrf.mxu2 }
  0xca   :  { %vm219_vm15 = vcmp.gt.f32.partialorder %v197_v26, 0.0 }
  0xcb   :  { %v179_v27 = vpop.f32.mrf.mxu0 }
  0xcc   :  { %vm212_vm13 = vcmp.gt.f32.partialorder %v179_v27, 0.0 }
  0xcd   :  { %vm481_vm14 = vmpackc.low %vm212_vm13, %vm211_vm12 }
  0xce   :  { %482 = vmatmul.msk.bf16.gmra.mxu1 %vm481_vm14, %v604_v19 }
  0xd1   :  { %v199_v28 = vpop.f32.mrf.mxu2 }
  0xd2   :  { %vm220_vm0 = vcmp.gt.f32.partialorder %v199_v28, 0.0 }
  0xd3   :  { %vm489_vm1 = vmpackc.low %vm220_vm0, %vm219_vm15  ;;  %v182_v29 = vpop.f32.mrf.mxu0 }
  0xd4   :  { %490 = vmatmul.msk.bf16.gmra.mxu3 %vm489_vm1, %v604_v19  ;;  %vm213_vm2 = vcmp.gt.f32.partialorder %v182_v29, 0.0 }
  0xd9   :  { %v202_v30 = vpop.f32.mrf.mxu2 }
  0xda   :  { %vm221_vm5 = vcmp.gt.f32.partialorder %v202_v30, 0.0 }
  0xdb   :  { %v184_v31 = vpop.f32.mrf.mxu0 }
  0xdc   :  { %vm214_vm3 = vcmp.gt.f32.partialorder %v184_v31, 0.0 }
  0xdd   :  { %vm483_vm4 = vmpackc.low %vm214_vm3, %vm213_vm2 }
  0xde   :  { %484 = vmatmul.msk.bf16.gmra.mxu1 %vm483_vm4, %v604_v19 }
  0xe1   :  { %v204_v32 = vpop.f32.mrf.mxu2 }
  0xe2   :  { %vm222_vm6 = vcmp.gt.f32.partialorder %v204_v32, 0.0 }
  0xe3   :  { %vm491_vm7 = vmpackc.low %vm222_vm6, %vm221_vm5 }
  0xe4   :  { %492 = vmatmul.msk.bf16.gmra.mxu3 %vm491_vm7, %v604_v19 }
 0x12b   :  { %v272_v33 = vpop.f32.mrf.mxu1 }
 0x12c   :  { %vm312_vm8 = vcmp.gt.f32.partialorder %v272_v33, 0.0 }
 0x12d   :  { %v493_v35 = vsel %vm312_vm8, 1.0, %v605_v34 }
 0x12e   :  { %360 = vst [vmem:[#allocation5] sm:$0xff] %v493_v35 }
 0x133   :  { %v274_v36 = vpop.f32.mrf.mxu1 }
 0x134   :  { %vm313_vm9 = vcmp.gt.f32.partialorder %v274_v36, 0.0 }
 0x135   :  { %v494_v37 = vsel %vm313_vm9, 1.0, %v605_v34 }
 0x136   :  { %361 = vst [vmem:[#allocation5 + $0x8] sm:$0xff] %v494_v37 }
 0x137   :  { %v292_v38 = vpop.f32.mrf.mxu3 }
 0x138   :  { %vm320_vm10 = vcmp.gt.f32.partialorder %v292_v38, 0.0 }
 0x139   :  { %v501_v39 = vsel %vm320_vm10, 1.0, %v605_v34 }
 0x13a   :  { %368 = vst [vmem:[#allocation5 + $0x40] sm:$0xff] %v501_v39 }
 0x13b   :  { %v277_v40 = vpop.f32.mrf.mxu1 }
 0x13c   :  { %vm314_vm11 = vcmp.gt.f32.partialorder %v277_v40, 0.0 }
 0x13d   :  { %v495_v41 = vsel %vm314_vm11, 1.0, %v605_v34 }
 0x13e   :  { %362 = vst [vmem:[#allocation5 + $0x10] sm:$0xff] %v495_v41 }
 0x13f   :  { %v294_v42 = vpop.f32.mrf.mxu3 }
 0x140   :  { %vm321_vm12 = vcmp.gt.f32.partialorder %v294_v42, 0.0 }
 0x141   :  { %v502_v43 = vsel %vm321_vm12, 1.0, %v605_v34 }
 0x142   :  { %369 = vst [vmem:[#allocation5 + $0x48] sm:$0xff] %v502_v43 }
 0x143   :  { %v279_v44 = vpop.f32.mrf.mxu1 }
 0x144   :  { %vm315_vm13 = vcmp.gt.f32.partialorder %v279_v44, 0.0 }
 0x145   :  { %v496_v45 = vsel %vm315_vm13, 1.0, %v605_v34 }
 0x146   :  { %363 = vst [vmem:[#allocation5 + $0x18] sm:$0xff] %v496_v45 }
 0x147   :  { %v297_v46 = vpop.f32.mrf.mxu3 }
 0x148   :  { %vm322_vm14 = vcmp.gt.f32.partialorder %v297_v46, 0.0 }
 0x149   :  { %v503_v47 = vsel %vm322_vm14, 1.0, %v605_v34 }
 0x14a   :  { %370 = vst [vmem:[#allocation5 + $0x50] sm:$0xff] %v503_v47 }
 0x14b   :  { %v282_v48 = vpop.f32.mrf.mxu1 }
 0x14c   :  { %vm316_vm15 = vcmp.gt.f32.partialorder %v282_v48, 0.0 }
 0x14d   :  { %v497_v49 = vsel %vm316_vm15, 1.0, %v605_v34 }
 0x14e   :  { %364 = vst [vmem:[#allocation5 + $0x20] sm:$0xff] %v497_v49 }
 0x14f   :  { %v299_v50 = vpop.f32.mrf.mxu3 }
 0x150   :  { %vm323_vm0 = vcmp.gt.f32.partialorder %v299_v50, 0.0 }
 0x151   :  { %v504_v51 = vsel %vm323_vm0, 1.0, %v605_v34 }
 0x152   :  { %371 = vst [vmem:[#allocation5 + $0x58] sm:$0xff] %v504_v51 }
 0x153   :  { %v284_v52 = vpop.f32.mrf.mxu1 }
 0x154   :  { %vm317_vm1 = vcmp.gt.f32.partialorder %v284_v52, 0.0 }
 0x155   :  { %v498_v53 = vsel %vm317_vm1, 1.0, %v605_v34 }
 0x156   :  { %365 = vst [vmem:[#allocation5 + $0x28] sm:$0xff] %v498_v53 }
 0x157   :  { %v302_v54 = vpop.f32.mrf.mxu3 }
 0x158   :  { %vm324_vm2 = vcmp.gt.f32.partialorder %v302_v54, 0.0 }
 0x159   :  { %v505_v55 = vsel %vm324_vm2, 1.0, %v605_v34 }
 0x15a   :  { %372 = vst [vmem:[#allocation5 + $0x60] sm:$0xff] %v505_v55 }
 0x15b   :  { %v287_v56 = vpop.f32.mrf.mxu1 }
 0x15c   :  { %vm318_vm3 = vcmp.gt.f32.partialorder %v287_v56, 0.0 }
 0x15d   :  { %v499_v57 = vsel %vm318_vm3, 1.0, %v605_v34 }
 0x15e   :  { %366 = vst [vmem:[#allocation5 + $0x30] sm:$0xff] %v499_v57 }
 0x15f   :  { %v304_v58 = vpop.f32.mrf.mxu3 }
 0x160   :  { %vm325_vm4 = vcmp.gt.f32.partialorder %v304_v58, 0.0 }
 0x161   :  { %v506_v59 = vsel %vm325_vm4, 1.0, %v605_v34 }
 0x162   :  { %373 = vst [vmem:[#allocation5 + $0x68] sm:$0xff] %v506_v59 }
 0x163   :  { %v289_v60 = vpop.f32.mrf.mxu1 }
 0x164   :  { %vm319_vm5 = vcmp.gt.f32.partialorder %v289_v60, 0.0 }
 0x165   :  { %v500_v61 = vsel %vm319_vm5, 1.0, %v605_v34 }
 0x166   :  { %367 = vst [vmem:[#allocation5 + $0x38] sm:$0xff] %v500_v61 }
 0x167   :  { %v307_v62 = vpop.f32.mrf.mxu3 }
 0x168   :  { %vm326_vm6 = vcmp.gt.f32.partialorder %v307_v62, 0.0 }
 0x169   :  { %v507_v63 = vsel %vm326_vm6, 1.0, %v605_v34 }
 0x16a   :  { %374 = vst [vmem:[#allocation5 + $0x70] sm:$0xff] %v507_v63 }
 0x16f   :  { %v309_v0 = vpop.f32.mrf.mxu3 }
 0x170   :  { %vm327_vm7 = vcmp.gt.f32.partialorder %v309_v0, 0.0 }
 0x171   :  { %v508_v1 = vsel %vm327_vm7, 1.0, %v605_v34 }
 0x172   :  { %375 = vst [vmem:[#allocation5 + $0x78] sm:$0xff] %v508_v1 }
 0x173   :  { %388 = dma.vmem_to_hbm [thread:$0]  %s381_s13, 2048, %s383_s16, [#allocation4], %s607_s17, %s607_s17, %s608_s18  }
 0x174   :  { %599 = dma.done.wait [#allocation4], 2048  }
 0x175   :  { %600 = vsyncadd [#allocation4], 4294965248 }
 0x176   :  { %393 = vsyncpa [#allocation3], 1 }
 0x177   :  { %394 = vsyncpa [#allocation4], 1 }

</bundles_post_ra>
